<compile_context>
chip_gen: v7x
topology: tpu7x:2x2x1
jax: 0.10.0
libtpu: 0.0.40
codegen_flags: <defaults>
</compile_context>

<pallas_src>
import math

import jax
import jax.numpy as jnp
from jax import lax
from jax.experimental import pallas as pl
from jax.experimental.pallas import tpu as pltpu

_MASK_NEG = -1e30  # large finite negative instead of -inf (avoids NaN rows)


def _vmem_capacity_bytes():
    """Physical VMEM of the local TPU generation (fallback: 64 MiB, safe on all)."""
    try:
        cap = int(pltpu.get_tpu_info().vmem_capacity_bytes)
        if cap > 0:
            return cap
    except Exception:
        pass
    return 64 * 1024 * 1024


def _estimate_step_vmem(gh, tq, S, D, itemsize, bias_itemsize):
    """Per-grid-step VMEM resident set: double-buffered I/O blocks + f32 temps."""
    dbuf = 2
    q_in = dbuf * gh * tq * D * itemsize
    kv_in = dbuf * 2 * gh * S * D * itemsize
    ctx_out = dbuf * gh * tq * D * itemsize
    score_out = dbuf * gh * tq * S * itemsize
    f32_tmp = 3 * gh * tq * S * 4           # f32 score / probs / temp slabs
    mask_in = dbuf * gh * tq * S * bias_itemsize
    return q_in + kv_in + ctx_out + score_out + f32_tmp + mask_in


def _pick_tiles(BH, S, D, itemsize, bias_itemsize, budget, gh_divides):
    """Pick (heads_per_block, q_row_tile, est_bytes) within the VMEM budget."""
    est = lambda gh, tq: _estimate_step_vmem(gh, tq, S, D, itemsize, bias_itemsize)
    if S <= 256:
        tq = S
    else:
        tq = None
        for cand in (256, 128, 64, 32, 16, 8):   # 256 fills the v6e/v7x MXU M dim
            if S % cand == 0 and est(1, cand) <= budget:
                tq = cand
                break
        if tq is None:
            for cand in range(256, 0, -8):        # any multiple-of-8 divisor of S
                if S % cand == 0 and est(1, cand) <= budget:
                    tq = cand
                    break
        if tq is None:
            # TODO(synk): S with no usable multiple-of-8 divisor falls back to full
            # rows (may exceed VMEM for huge prime-ish S); padding + masked stores
            # would be needed to tile further.
            tq = S
    gh = 1
    if tq * S <= 128 * 128:  # tiny per-head work: amortize ~0.35us/grid-step overhead
        for cand in (32, 16, 8, 4, 2):
            if (BH % cand == 0 and gh_divides % cand == 0 and BH // cand >= 2
                    and est(cand, tq) <= budget):
                gh = cand
                break
    return gh, tq, est(gh, tq)


def _softmax_rows(score):
    """Row softmax of an f32 [..., S] slab using EUP exp + EUP reciprocal."""
    m = jnp.max(score, axis=-1, keepdims=True)
    p = jnp.exp(score - m)
    denom = jnp.sum(p, axis=-1, keepdims=True)
    inv = pl.reciprocal(denom, approx=True)     # EUP slot (cheap)
    inv = inv * (2.0 - denom * inv)             # one Newton step -> ~f32 accuracy
    return p * inv


def _make_kernel(mask_mode, tq, mxu_dtype, reuse_attn_cast):
    """mask_mode in {"none", "resident", "block"}."""

    def _core(q_ref, k_ref, v_ref, o_ref, s_ref, bias):
        scale = jnp.asarray(1.0 / math.sqrt(q_ref.shape[-1]), mxu_dtype)
        q = q_ref[...].astype(mxu_dtype) * scale            # fold 1/sqrt(d_k) into q
        k = k_ref[...].astype(mxu_dtype)
        score = lax.dot_general(q, k, (((2,), (2,)), ((0,), (0,))),
                                preferred_element_type=jnp.float32)
        if bias is not None:
            score = score + bias
        attn = _softmax_rows(score)
        attn_lp = attn.astype(mxu_dtype)                    # single full-slab cast
        ctx = lax.dot_general(attn_lp, v_ref[...].astype(mxu_dtype),
                              (((2,), (1,)), ((0,), (0,))),
                              preferred_element_type=jnp.float32)
        o_ref[...] = ctx.astype(o_ref.dtype)
        # Reuse the already-cast slab for the score output when dtypes match.
        s_ref[...] = attn_lp if reuse_attn_cast else attn.astype(s_ref.dtype)

    if mask_mode == "none":
        def kernel(q_ref, k_ref, v_ref, o_ref, s_ref):
            _core(q_ref, k_ref, v_ref, o_ref, s_ref, None)
    elif mask_mode == "resident":
        # Whole [1,S,S] bias lives in VMEM (DMA'd once); slice rows per q-tile.
        def kernel(q_ref, k_ref, v_ref, m_ref, o_ref, s_ref):
            row0 = pl.multiple_of(pl.program_id(1) * tq, tq)
            bias = m_ref[:, pl.ds(row0, tq), :].astype(jnp.float32)
            _core(q_ref, k_ref, v_ref, o_ref, s_ref, bias)
    else:
        def kernel(q_ref, k_ref, v_ref, m_ref, o_ref, s_ref):
            _core(q_ref, k_ref, v_ref, o_ref, s_ref, m_ref[...].astype(jnp.float32))
    return kernel


def attention(q, k, v, mask=None, *, prefer_bf16_matmul=False):
    """Pallas implementation of PyTorch `Attention.forward`.

    Returns (context [B,H,S,D], score [B,H,S,S]).
    """
    B, H, S, D = q.shape
    BH = B * H
    dtype = q.dtype
    itemsize = jnp.dtype(dtype).itemsize

    cap = _vmem_capacity_bytes()
    budget = (cap * 3) // 4                     # ~96 MiB on v5e/v6e, ~48 MiB on v7x

    # ---- classify the mask (broadcastable to [B, H, S, S]) ----
    mask_kind = "none"
    keep4 = None
    if mask is not None:
        keep = jnp.asarray(mask) != 0           # torch: masked_fill(mask == 0, -inf)
        while keep.ndim < 4:
            keep = keep[None]
        keep = jnp.broadcast_to(keep, (keep.shape[0], keep.shape[1], S, S))
        mb, mh = keep.shape[0], keep.shape[1]
        if mb == 1 and mh == 1:
            mask_kind = "shared"
        elif mh == 1 and mb == B:
            mask_kind = "per_batch"
        else:
            mask_kind = "full"
        keep4 = keep

    gh_divides = H if mask_kind == "per_batch" else BH
    bias_itemsize = 2 if mask_kind != "none" else 0
    gh, tq, est = _pick_tiles(BH, S, D, itemsize, bias_itemsize, budget, gh_divides)
    n_bh, n_q = BH // gh, S // tq

    q3 = q.reshape(BH, S, D)
    k3 = k.reshape(BH, S, D)
    v3 = v.reshape(BH, S, D)

    q_spec = pl.BlockSpec((gh, tq, D), lambda g, qi: (g, qi, 0))
    kv_spec = pl.BlockSpec((gh, S, D), lambda g, qi: (g, 0, 0))   # resident across qi
    o_spec = pl.BlockSpec((gh, tq, D), lambda g, qi: (g, qi, 0))
    s_spec = pl.BlockSpec((gh, tq, S), lambda g, qi: (g, qi, 0))

    inputs = [q3, k3, v3]
    in_specs = [q_spec, kv_spec, kv_spec]

    mask_mode = "none"
    mask_bytes = 0
    if mask_kind != "none":
        if mask_kind == "shared" and est + 2 * S * S * 4 <= budget:
            # Shared mask, small enough: keep the whole [1,S,S] f32 bias resident
            # (DMA'd once instead of once per grid step).
            mask_mode = "resident"
            bias = jnp.where(keep4[0, 0], 0.0, _MASK_NEG).astype(jnp.float32)[None]
            m_spec = pl.BlockSpec((1, S, S), lambda g, qi: (0, 0, 0))
        elif mask_kind == "shared":
            mask_mode = "block"
            bias = jnp.where(keep4[0, 0], 0.0, _MASK_NEG).astype(jnp.bfloat16)[None]
            m_spec = pl.BlockSpec((1, tq, S), lambda g, qi: (0, qi, 0))
        elif mask_kind == "per_batch":
            # [B,S,S] bias; batch index derived from the fused head-group index
            # (gh constrained to divide H), so the mask is never tiled H times.
            mask_mode = "block"
            bias = jnp.where(keep4[:, 0], 0.0, _MASK_NEG).astype(jnp.bfloat16)
            m_spec = pl.BlockSpec((1, tq, S), lambda g, qi: ((g * gh) // H, qi, 0))
        else:
            mask_mode = "block"
            bias = jnp.where(keep4, 0.0, _MASK_NEG).astype(jnp.bfloat16)
            bias = jnp.broadcast_to(bias, (B, H, S, S)).reshape(BH, S, S)
            m_spec = pl.BlockSpec((gh, tq, S), lambda g, qi: (g, qi, 0))
        inputs.append(bias)
        in_specs.append(m_spec)
        mask_bytes = int(bias.size) * bias.dtype.itemsize

    use_bf16_mxu = bool(prefer_bf16_matmul) and dtype == jnp.float32
    mxu_dtype = jnp.bfloat16 if use_bf16_mxu else dtype
    reuse_attn_cast = not use_bf16_mxu

    kernel = _make_kernel(mask_mode, tq, mxu_dtype, reuse_attn_cast)

    flops = 4 * BH * S * S * D
    transcendentals = BH * S * S
    bytes_accessed = (4 * BH * S * D + BH * S * S) * itemsize + mask_bytes

    vmem_limit = budget
    if est > budget:   # graceful degradation for awkward shapes instead of OOM
        vmem_limit = min(int(est + (4 << 20)), max(cap - (4 << 20), budget))

    cparams = pltpu.CompilerParams(
        dimension_semantics=("parallel", "parallel"),
        vmem_limit_bytes=int(vmem_limit),
    )

    out_shapes = (jax.ShapeDtypeStruct((BH, S, D), dtype),
                  jax.ShapeDtypeStruct((BH, S, S), dtype))

    out3, score3 = pl.pallas_call(
        kernel,
        grid=(n_bh, n_q),
        in_specs=in_specs,
        out_specs=(o_spec, s_spec),
        out_shape=out_shapes,
        compiler_params=cparams,
        cost_estimate=pl.CostEstimate(flops=int(flops),
                                      transcendentals=int(transcendentals),
                                      bytes_accessed=int(bytes_accessed)),
    )(*inputs)

    return out3.reshape(B, H, S, D), score3.reshape(B, H, S, S)


def _reference(q, k, v, mask=None):
    d_k = k.shape[-1]
    score = jnp.einsum("bhqd,bhkd->bhqk", q, k) / math.sqrt(d_k)
    if mask is not None:
        score = jnp.where(mask == 0, -jnp.inf, score)
    score = jax.nn.softmax(score, axis=-1)
    return jnp.einsum("bhqk,bhkd->bhqd", score, v), score


if __name__ == "__main__":
    # Small shapes consistent with the module: batch=2, heads=4, seq=8, d_k=32.
    B, H, S, D = 2, 4, 8, 32
    key = jax.random.PRNGKey(0)
    kq, kk, kv_, _ = jax.random.split(key, 4)
    q = jax.random.normal(kq, (B, H, S, D), dtype=jnp.float32)
    k = jax.random.normal(kk, (B, H, S, D), dtype=jnp.float32)
    v = jax.random.normal(kv_, (B, H, S, D), dtype=jnp.float32)

    # Unmasked path.
    out, score = attention(q, k, v)
    jax.block_until_ready((out, score))
    r_out, r_score = _reference(q, k, v)
    assert jnp.allclose(out, r_out, atol=1e-4, rtol=1e-4)
    assert jnp.allclose(score, r_score, atol=1e-4, rtol=1e-4)

    # Shared causal mask [1,1,S,S] (exercises the resident-bias path).
    mask = jnp.tril(jnp.ones((1, 1, S, S), dtype=jnp.int32))
    out_m, score_m = attention(q, k, v, mask)
    jax.block_until_ready((out_m, score_m))
    r_out_m, r_score_m = _reference(q, k, v, jnp.broadcast_to(mask, (B, H, S, S)))
    assert jnp.allclose(out_m, r_out_m, atol=1e-4, rtol=1e-4)
    assert jnp.allclose(score_m, r_score_m, atol=1e-4, rtol=1e-4)

    # Per-batch padding-style mask [B,1,S,S] (exercises the batch-indexed path).
    lens = jnp.array([S, S - 2])
    kmask = (jnp.arange(S)[None, :] < lens[:, None]).astype(jnp.int32)   # (B, S)
    mask_b = jnp.broadcast_to(kmask[:, None, None, :], (B, 1, S, S))
    out_b, score_b = attention(q, k, v, mask_b)
    jax.block_until_ready((out_b, score_b))
    r_out_b, r_score_b = _reference(q, k, v, jnp.broadcast_to(mask_b, (B, H, S, S)))
    assert jnp.allclose(out_b, r_out_b, atol=1e-4, rtol=1e-4)
    assert jnp.allclose(score_b, r_score_b, atol=1e-4, rtol=1e-4)

    # bf16 inputs exercise the native bf16 MXU path (looser tolerance).
    qb, kb, vb = (x.astype(jnp.bfloat16) for x in (q, k, v))
    out_bf, _ = attention(qb, kb, vb, mask)
    jax.block_until_ready(out_bf)
    assert jnp.allclose(out_bf.astype(jnp.float32), r_out_m, atol=5e-2, rtol=5e-2)

    print("KERNEL_OK")
</pallas_src>

<mosaic_0001>
module attributes {stable_mosaic.version = 11 : i64} {
  func.func @kernel(%arg0: i32, %arg1: i32, %arg2: memref<4x8x32xf32, #tpu.memory_space<vmem>>, %arg3: memref<4x8x32xf32, #tpu.memory_space<vmem>>, %arg4: memref<4x8x32xf32, #tpu.memory_space<vmem>>, %arg5: memref<4x8x32xf32, #tpu.memory_space<vmem>>, %arg6: memref<4x8x8xf32, #tpu.memory_space<vmem>>) attributes {dimension_semantics = [#tpu.dimension_semantics<parallel>, #tpu.dimension_semantics<parallel>], iteration_bounds = array<i64: 2, 1>, scalar_prefetch = 0 : i64, scratch_operands = 0 : i64, tpu.core_type = #tpu.core_type<tc>, window_params = [{transform_indices = @transform_0, window_bounds = array<i64: 4, 8, 32>}, {transform_indices = @transform_1, window_bounds = array<i64: 4, 8, 32>}, {transform_indices = @transform_2, window_bounds = array<i64: 4, 8, 32>}, {transform_indices = @transform_3, window_bounds = array<i64: 4, 8, 32>}, {transform_indices = @transform_4, window_bounds = array<i64: 4, 8, 8>}]} {
    %c0 = arith.constant 0 : index
    %c0_0 = arith.constant 0 : index
    %c0_1 = arith.constant 0 : index
    %0 = vector.load %arg2[%c0, %c0_0, %c0_1] : memref<4x8x32xf32, #tpu.memory_space<vmem>>, vector<4x8x32xf32>
    %cst = arith.constant 0.176776692 : f32
    %1 = vector.broadcast %cst : f32 to vector<4x8x32xf32>
    %2 = arith.mulf %0, %1 : vector<4x8x32xf32>
    %c0_2 = arith.constant 0 : index
    %c0_3 = arith.constant 0 : index
    %c0_4 = arith.constant 0 : index
    %3 = vector.load %arg3[%c0_2, %c0_3, %c0_4] : memref<4x8x32xf32, #tpu.memory_space<vmem>>, vector<4x8x32xf32>
    %cst_5 = arith.constant dense<0.000000e+00> : vector<4x8x8xf32>
    %4 = tpu.matmul %2, %3, %cst_5 {dimension_numbers = #tpu.dot_dimension_numbers<[2], [2], [1], [1], [0, 0, 0, 1, 1, 1], [0], [0]>} : vector<4x8x32xf32>, vector<4x8x32xf32>, vector<4x8x8xf32> -> vector<4x8x8xf32>
    %cst_6 = arith.constant dense<0xFF800000> : vector<4x8xf32>
    %5 = vector.multi_reduction <maximumf>, %4, %cst_6 [2] : vector<4x8x8xf32> to vector<4x8xf32>
    %6 = vector.shape_cast %5 : vector<4x8xf32> to vector<4x8x1xf32>
    %7 = vector.broadcast %6 : vector<4x8x1xf32> to vector<4x8x8xf32>
    %8 = arith.subf %4, %7 : vector<4x8x8xf32>
    %9 = math.exp %8 : vector<4x8x8xf32>
    %cst_7 = arith.constant dense<0.000000e+00> : vector<4x8xf32>
    %10 = vector.multi_reduction <add>, %9, %cst_7 [2] : vector<4x8x8xf32> to vector<4x8xf32>
    %11 = vector.shape_cast %10 : vector<4x8xf32> to vector<4x8x1xf32>
    %12 = tpu.reciprocal %11 {approx = true} : vector<4x8x1xf32> -> vector<4x8x1xf32>
    %13 = arith.mulf %11, %12 : vector<4x8x1xf32>
    %cst_8 = arith.constant 2.000000e+00 : f32
    %14 = vector.broadcast %cst_8 : f32 to vector<4x8x1xf32>
    %15 = arith.subf %14, %13 : vector<4x8x1xf32>
    %16 = arith.mulf %12, %15 : vector<4x8x1xf32>
    %17 = vector.broadcast %16 : vector<4x8x1xf32> to vector<4x8x8xf32>
    %18 = arith.mulf %9, %17 : vector<4x8x8xf32>
    %c0_9 = arith.constant 0 : index
    %c0_10 = arith.constant 0 : index
    %c0_11 = arith.constant 0 : index
    %19 = vector.load %arg4[%c0_9, %c0_10, %c0_11] : memref<4x8x32xf32, #tpu.memory_space<vmem>>, vector<4x8x32xf32>
    %cst_12 = arith.constant dense<0.000000e+00> : vector<4x8x32xf32>
    %20 = tpu.matmul %18, %19, %cst_12 {dimension_numbers = #tpu.dot_dimension_numbers<[2], [1], [1], [2], [0, 0, 0, 1, 1, 2], [0], [0]>} : vector<4x8x8xf32>, vector<4x8x32xf32>, vector<4x8x32xf32> -> vector<4x8x32xf32>
    %c0_13 = arith.constant 0 : index
    %c0_14 = arith.constant 0 : index
    %c0_15 = arith.constant 0 : index
    %21 = vector.load %arg5[%c0_13, %c0_14, %c0_15] : memref<4x8x32xf32, #tpu.memory_space<vmem>>, vector<4x8x32xf32>
    tpu.vector_store %arg5[%c0_13, %c0_14, %c0_15], %20 {strides = array<i32>} : memref<4x8x32xf32, #tpu.memory_space<vmem>>, vector<4x8x32xf32>,
    %c0_16 = arith.constant 0 : index
    %c0_17 = arith.constant 0 : index
    %c0_18 = arith.constant 0 : index
    %22 = vector.load %arg6[%c0_16, %c0_17, %c0_18] : memref<4x8x8xf32, #tpu.memory_space<vmem>>, vector<4x8x8xf32>
    tpu.vector_store %arg6[%c0_16, %c0_17, %c0_18], %18 {strides = array<i32>} : memref<4x8x8xf32, #tpu.memory_space<vmem>>, vector<4x8x8xf32>,
    return
  }
  func.func @transform_0(%arg0: i32, %arg1: i32) -> (i32, i32, i32) {
    %c0_i32 = arith.constant 0 : i32
    %c0_i32_0 = arith.constant 0 : i32
    return %arg0, %arg1, %c0_i32 : i32, i32, i32
  }
  func.func @transform_1(%arg0: i32, %arg1: i32) -> (i32, i32, i32) {
    %c0_i32 = arith.constant 0 : i32
    %c0_i32_0 = arith.constant 0 : i32
    %c0_i32_1 = arith.constant 0 : i32
    return %arg0, %c0_i32, %c0_i32_0 : i32, i32, i32
  }
  func.func @transform_2(%arg0: i32, %arg1: i32) -> (i32, i32, i32) {
    %c0_i32 = arith.constant 0 : i32
    %c0_i32_0 = arith.constant 0 : i32
    %c0_i32_1 = arith.constant 0 : i32
    return %arg0, %c0_i32, %c0_i32_0 : i32, i32, i32
  }
  func.func @transform_3(%arg0: i32, %arg1: i32) -> (i32, i32, i32) {
    %c0_i32 = arith.constant 0 : i32
    %c0_i32_0 = arith.constant 0 : i32
    return %arg0, %arg1, %c0_i32 : i32, i32, i32
  }
  func.func @transform_4(%arg0: i32, %arg1: i32) -> (i32, i32, i32) {
    %c0_i32 = arith.constant 0 : i32
    %c0_i32_0 = arith.constant 0 : i32
    return %arg0, %arg1, %c0_i32 : i32, i32, i32
  }
}

</mosaic_0001>

<bundles_post_ra>
// kernel: tpu_custom_call.1
= control target key start
LH: loop header
LB: loop body
LE: loop exit
PB: predicated region body
PF: predicated region fallthrough
CT: control target
= control target key end

     0   :  { %s2034_s0 = inlined_call_operand.hbm [shape: f32[8,8,32], index: 0, kind: input, shape index: {}]   ;;  %s2035_s1 = inlined_call_operand.hbm [shape: f32[8,8,32], index: 1, kind: input, shape index: {}]   ;;  %s2036_s2 = inlined_call_operand.hbm [shape: f32[8,8,32], index: 2, kind: input, shape index: {}]   ;;  %s2037_s3 = inlined_call_operand.hbm [shape: f32[8,8,32], index: 3, kind: output, shape index: {0}]   ;;  %s2038_s4 = inlined_call_operand.hbm [shape: f32[8,8,8], index: 4, kind: output, shape index: {1}]  }
   0x1   :  { %2050 = sst [smem:[#allocation19_spill]] %s2035_s1 }
   0x2   :  { %10 = vsyncpa [#allocation3], 0 }
   0x3   :  { %12 = vsyncpa [#allocation3 + $0x1], 0 }
   0x4   :  { %13 = vsyncpa [#allocation6], 0 }
   0x5   :  { %15 = vsyncpa [#allocation6 + $0x1], 0 }
   0x6   :  { %16 = vsyncpa [#allocation4], 0 }
   0x7   :  { %18 = vsyncpa [#allocation4 + $0x1], 0 }
   0x8   :  { %19 = vsyncpa [#allocation10], 0 }
   0x9   :  { %21 = vsyncpa [#allocation10 + $0x1], 0  ;;  %s1650_s15 = smov 0   ;;  %s1652_s16 = smov 0  }
   0xa   :  { %s1654_s17 = smov 0   ;;  %s1656_s18 = smov 0  }
   0xb   :  { %s1658_s19 = smov 0   ;;  %s1660_s20 = smov 0  }
   0xc LB: > { %2051 = sst [smem:[#allocation15_spill]] %s1608_s19  ;;  %s1681_s21 = sadd.s32 4294967295, %s1612_s20   ;;  %s1612_s20 = sphi %s1660_s20, %s27_s20   ;;  %s1608_s19 = sphi %s1658_s19, %s2076_s19   ;;  %s1604_s18 = sphi %s1656_s18, %s2075_s18   ;;  %s1600_s17 = sphi %s1654_s17, %s2079_s17   ;;  %s1596_s16 = sphi %s1652_s16, %s2078_s16   ;;  %s1592_s15 = sphi %s1650_s15, %s2077_s15  }
   0xd   : > { %2052 = sst [smem:[#allocation16_spill]] %s1612_s20  ;;  %s1206_s22 = sadd.s32 4294967294, %s1612_s20  }
   0xe   : > { %s39_s23 = sadd.s32 1, %s1608_s19  ;;  %s48_s24 = sadd.s32 1, %s1600_s17 }
   0xf   : > { %p41_p0 = scmp.ge.s32.totalorder %s39_s23, 2  ;;  %p55_p1 = scmp.ne.s32.totalorder %s1600_s17, %s1596_s16 }
  0x10   : > { %p56_p2 = scmp.eq.s32.totalorder %s1612_s20, 0  ;;  %p61_p3 = scmp.ne.s32.totalorder %s1596_s16, %s1592_s15 }
  0x11   : > { %s2081_s23 = smov (%p41_p0, %s39_s23), 0  ;;  %p62_p5 = scmp.eq.s32.totalorder %s1681_s21, 0 }
  0x12   : > { %2053 = sst [smem:[#allocation17_spill]] %s2081_s23  ;;  %p1693_p4 = por %p56_p2, %p55_p1 }
  0x13   : > { %s43_s26 = ssub.s32 %s1608_s19, %s2081_s23  ;;  %p139_p6 = scmp.eq.s32.totalorder %s1681_s21, 1 }
  0x14   : > { %p46_p7 = scmp.eq.s32.totalorder %s43_s26, 0  ;;  %p1701_p8 = por %p62_p5, %p61_p3 }
  0x15   : > { %p1705_p9 = por %p139_p6, %p55_p1  ;;  %p145_p10 = scmp.eq.s32.totalorder %s1206_s22, 1 }
  0x16   : > { %s2055_s27 = scalar_select %p1701_p8, 1, 0 }
  0x17   : > { %s2056_s28 = scalar_select %p1705_p9, 1, 0 }
  0x18   : > { %s1710_s29 = scalar_select %p46_p7, %s1600_s17, %s48_s24  }
  0x19   : > { %p1712_p11 = por %p145_p10, %p61_p3  ;;  %p1332_p13 = scmp.lt.s32.totalorder %s1612_s20, 2 }
  0x1a   : > { %2057 = sst [smem:[#allocation18_spill]] %s1710_s29  ;;  %s2039_s5 = sand.u32 1, %s1600_s17  }
  0x1b   : > { %s2058_s30 = scalar_select %p1712_p11, 1, 0 }
  0x1c   : > { %s1721_s6 = sshll.u32 %s2039_s5, 5  ;;  %s1724_s7 = sshll.u32 %s1608_s19, 9 }
  0x1d   : > { %p1728_p0 = pnand %p1332_p13, %p1693_p4  ;;  %s215_s9 = sand.u32 1, %s1612_s20  }
  0x1e   : > { %s2060_s1 = sld [smem:[#allocation19_spill]]  ;;  %s219_s13 = scalar_lea.vmem [#allocation5], %s1721_s6 }
  0x1f   : > { %s226_s14 = sshll.u32 %s219_s13, 4  ;;  %s1744_s22 = scalar_lea.sflag [#allocation6], %s215_s9  ;;  %s1741_s14 = int_to_ptr.vmem [resolvable:$true] %s226_s14 }
  0x20   : > { %p1750_p4 = pneg %p1728_p0 }
  0x24   : > { %s1737_s12 = scalar_lea.hbm %s2060_s1, %s1724_s7  ;;  %s1409_s11 = scalar_lea.hbm %s2060_s1, 1024 }
  0x25   : > { %s1404_s24 = scalar_lea.hbm %s1737_s12, 512  ;;  %p1410_p7 = scmp.lt.u32.totalorder %s1737_s12, %s2060_s1 }
  0x26   : > { %p1405_p3 = scmp.ne.s32.totalorder %s1737_s12, %s1404_s24  ;;  %p1411_p10 = scmp.lt.u32.totalorder %s1409_s11, %s1404_s24 }
  0x27   : > { %p1413_p12 = scmp.lt.u32.totalorder %s1404_s24, %s1737_s12 }
  0x28   : > { %p1407_p5 = pnand %p1750_p4, %p1405_p3  ;;  %p1412_p13 = por %p1411_p10, %p1410_p7 }
  0x2a   : > { %p1408_p6 = pneg %p1407_p5  ;;  %p1414_p1 = por %p1413_p12, %p1412_p13 }
  0x2c   : > { %p1415_p2 = pnand %p1414_p1, %p1408_p6 }
  0x2e   : > { %1418 = shalt.err (!%p1415_p2)
}
  0x2f   : > { %s1419_s9 = scalar_lea.vmem %s1741_s14, 512  ;;  %s1614_s26 = smov [#allocation5]  }
  0x30   : > { %p1420_p3 = scmp.ne.s32.totalorder %s1741_s14, %s1419_s9  ;;  %s1424_s10 = sshll.u32 %s1614_s26, 4  ;;  %s1425_s10 = int_to_ptr.vmem [resolvable:$false] %s1424_s10 }
  0x31   : > { %s1426_s5 = scalar_lea.vmem %s1425_s10, 1024  ;;  %p1427_p9 = scmp.lt.s32.totalorder %s1741_s14, %s1425_s10 }
  0x32   : > { %p1422_p5 = pnand %p1420_p3, %p1750_p4  ;;  %p1428_p8 = scmp.lt.s32.totalorder %s1426_s5, %s1419_s9 }
  0x34   : > { %p1423_p11 = pneg %p1422_p5  ;;  %p1429_p7 = por %p1428_p8, %p1427_p9 }
  0x36   : > { %p1430_p10 = pnand %p1429_p7, %p1423_p11 }
  0x38   : > { %1433 = shalt.err (!%p1430_p10)
}
  0x39   : > { %s2042_s24 = smov 128   ;;  %s2044_s11 = smov 8  }
  0x3a   : > { %1321 = dma.hbm_to_vmem [thread:$0]  (!%p1728_p0), %s1737_s12, 512, %s1741_s14, %s1744_s22, %s2042_s24, %s2042_s24, %s2044_s11  }
  0x3b   : > { %p2062_p8 = scmp.lt.s32.totalorder %s1612_s20, 3  ;;  %p2063_p9 = scmp.ge.s32.totalorder %s1612_s20, 1 }
  0x3c   : > { %s1789_s10 = scalar_lea.hbm %s2034_s0, %s1724_s7  ;;  %s197_s5 = scalar_lea.vmem [#allocation2], %s1721_s6 }
  0x3d   : > { %p1781_p11 = pnand %p2063_p9, %p2062_p8  ;;  %s205_s1 = sshll.u32 %s197_s5, 4  ;;  %s1792_s1 = int_to_ptr.vmem [resolvable:$true] %s205_s1 }
  0x3e   : > { %s1798_s24 = scalar_lea.hbm %s2036_s2, %s1724_s7  ;;  %s2065_s11 = sand.u32 1, %s1600_s17  }
  0x3f   : > { %s2064_s13 = scalar_select %p1781_p11, 1, 0 }
  0x40   : > { %s1802_s23 = scalar_lea.sflag [#allocation3], %s2065_s11  ;;  %s1434_s19 = scalar_lea.hbm %s1789_s10, 512 }
  0x41   : > { %p1435_p12 = scmp.ne.s32.totalorder %s1789_s10, %s1434_s19  ;;  %s1439_s29 = scalar_lea.hbm %s2034_s0, 1024 }
  0x42   : > { %p1440_p6 = scmp.lt.u32.totalorder %s1789_s10, %s2034_s0  ;;  %p1441_p13 = scmp.lt.u32.totalorder %s1439_s29, %s1434_s19 }
  0x43   : > { %p1437_p1 = pnand %p1435_p12, %p1750_p4  ;;  %p1443_p5 = scmp.lt.u32.totalorder %s1434_s19, %s1789_s10 }
  0x44   : > { %p1442_p3 = por %p1441_p13, %p1440_p6 }
  0x45   : > { %p1438_p2 = pneg %p1437_p1 }
  0x46   : > { %p1444_p7 = por %p1443_p5, %p1442_p3 }
  0x48   : > { %p1445_p10 = pnand %p1444_p7, %p1438_p2 }
  0x4a   : > { %1448 = shalt.err (!%p1445_p10)
}
  0x4b   : > { %s1449_s7 = scalar_lea.vmem %s1792_s1, 512  ;;  %s1617_s11 = smov [#allocation2]  }
  0x4c   : > { %p1450_p8 = scmp.ne.s32.totalorder %s1792_s1, %s1449_s7  ;;  %s1454_s12 = sshll.u32 %s1617_s11, 4  ;;  %s1455_s12 = int_to_ptr.vmem [resolvable:$false] %s1454_s12 }
  0x4d   : > { %s1456_s20 = scalar_lea.vmem %s1455_s12, 1024  ;;  %p1457_p1 = scmp.lt.s32.totalorder %s1792_s1, %s1455_s12 }
  0x4e   : > { %p1452_p9 = pnand %p1450_p8, %p1750_p4  ;;  %p1458_p11 = scmp.lt.s32.totalorder %s1456_s20, %s1449_s7 }
  0x50   : > { %p1453_p12 = pneg %p1452_p9  ;;  %p1459_p6 = por %p1458_p11, %p1457_p1 }
  0x52   : > { %p1460_p13 = pnand %p1459_p6, %p1453_p12 }
  0x54   : > { %1463 = shalt.err (!%p1460_p13)
}
  0x55   : > { %s2066_s19 = smov 8   ;;  %s2067_s29 = smov 128  }
  0x56   : > { %1318 = dma.hbm_to_vmem [thread:$0]  (!%p1728_p0), %s1789_s10, 512, %s1792_s1, %s1802_s23, %s2067_s29, %s2067_s29, %s2066_s19  }
  0x57   : > { %s240_s14 = scalar_lea.vmem [#allocation7], %s1721_s6  ;;  %s1464_s26 = scalar_lea.hbm %s1798_s24, 512 }
  0x58   : > { %s247_s9 = sshll.u32 %s240_s14, 4  ;;  %p1465_p11 = scmp.ne.s32.totalorder %s1798_s24, %s1464_s26  ;;  %s1830_s9 = int_to_ptr.vmem [resolvable:$true] %s247_s9 }
  0x59   : > { %s1469_s11 = scalar_lea.hbm %s2036_s2, 1024  ;;  %p1470_p5 = scmp.lt.u32.totalorder %s1798_s24, %s2036_s2 }
  0x5a   : > { %p1467_p2 = pnand %p1465_p11, %p1750_p4  ;;  %p1471_p7 = scmp.lt.u32.totalorder %s1469_s11, %s1464_s26 }
  0x5b   : > { %p1473_p8 = scmp.lt.u32.totalorder %s1464_s26, %s1798_s24 }
  0x5c   : > { %p1468_p3 = pneg %p1467_p2  ;;  %p1472_p10 = por %p1471_p7, %p1470_p5 }
  0x5e   : > { %p1474_p9 = por %p1473_p8, %p1472_p10 }
  0x60   : > { %p1475_p12 = pnand %p1474_p9, %p1468_p3 }
  0x62   : > { %1478 = shalt.err (!%p1475_p12)
}
  0x63   : > { %s1479_s1 = scalar_lea.vmem %s1830_s9, 512  ;;  %s1618_s23 = smov [#allocation7]  }
  0x64   : > { %p1480_p1 = scmp.ne.s32.totalorder %s1830_s9, %s1479_s1  ;;  %s1484_s6 = sshll.u32 %s1618_s23, 4  ;;  %s1485_s6 = int_to_ptr.vmem [resolvable:$false] %s1484_s6 }
  0x65   : > { %s1486_s10 = scalar_lea.vmem %s1485_s6, 1024  ;;  %p1487_p11 = scmp.lt.s32.totalorder %s1830_s9, %s1485_s6 }
  0x66   : > { %p1482_p6 = pnand %p1480_p1, %p1750_p4  ;;  %p1488_p2 = scmp.lt.s32.totalorder %s1486_s10, %s1479_s1 }
  0x68   : > { %p1483_p13 = pneg %p1482_p6  ;;  %p1489_p5 = por %p1488_p2, %p1487_p11 }
  0x6a   : > { %p1490_p7 = pnand %p1489_p5, %p1483_p13 }
  0x6c   : > { %1493 = shalt.err (!%p1490_p7)
}
  0x6d   : > { %1324 = dma.hbm_to_vmem [thread:$0]  (!%p1728_p0), %s1798_s24, 512, %s1830_s9, %s1744_s22, %s2067_s29, %s2067_s29, %s2066_s19  }
  0x6e   : > { %p2068_p4 = scmp.ne.s32.totalorder %s2064_s13, 0 }
  0x6f   : > { %s1860_s25 = sand.u32 (!%p2068_p4), 1, %s1596_s16   ;;  %p2069_p3 = scmp.ne.s32.totalorder (!%p2068_p4), %s2055_s27, 0 }
  0x70   : > { %259 = sbr.rel (%p2068_p4) target bundleno = 895 (0x37f), region = 32  ;;  %s1863_s14 = sshll.u32 (!%p2068_p4), %s1860_s25, 5 }
  0x71   : > { %s262_s8 = scalar_lea.sflag (!%p2068_p4), [#allocation3], %s1860_s25  ;;  %s265_s26 = scalar_lea.vmem (!%p2068_p4), [#allocation2], %s1863_s14 }
  0x77   : > { %1575 = dma.done.wait (%p2069_p3), %s262_s8, 512  }
  0x78   : > { %1577 = vsyncadd (%p2069_p3), %s262_s8, 4294966784  ;;  %s270_s22 = sand.u32 1, %s1681_s21   ;;  %s274_s13 = scalar_lea.vmem [#allocation5], %s1863_s14 }
  0x79   : > { %s271_s24 = scalar_lea.sflag [#allocation6], %s270_s22 }
  0x7a   : > { %1579 = dma.done.wait (%p2069_p3), %s271_s24, 1024  }
  0x7b   : > { %1581 = vsyncadd (%p2069_p3), %s271_s24, 4294966272  ;;  %v1619_v0 = vmov 0.0   ;;  %vm1620_vm0 = vmmov 0   ;;  %vm340_vm1 = vcmask 261120   ;;  %v336_v1 = vld [vmem:[%s274_s13] sm:$0xff]  ;;  %v337_v3 = vld [vmem:[%s274_s13 + $0x8] sm:$0xff] }
  0x7c   : > { %1265 = vmatprep.subr.mxu0 %v1619_v0  ;;  %1267 = vmatprep.mubr.msk.f32.mxu0 %vm1620_vm0, %v1619_v0  ;;  %v328_v2 = vld [vmem:[%s265_s26] sm:$0xff]  ;;  %v329_v5 = vld [vmem:[%s265_s26 + $0x8] sm:$0xff]  ;;  %v330_v6 = vld [vmem:[%s265_s26 + $0x10] sm:$0xff]  ;;  %vm645_vm2 = vcmask 64512   ;;  %s1912_s21 = scalar_lea.vmem [#allocation7], %s1863_s14  ;;  %s322_s27 = scalar_lea.vmem [#allocation9], %s1863_s14 }
  0x7d   : > { %1270 = vmatprep.subr.mxu1 %v1619_v0  ;;  %1272 = vmatprep.mubr.msk.f32.mxu1 %vm1620_vm0, %v1619_v0  ;;  %v332_v4 = vmul.f32 0.17677669, %v328_v2  ;;  %v338_v7 = vld [vmem:[%s274_s13 + $0x10] sm:$0xff]  ;;  %v333_v8 = vmul.f32 0.17677669, %v329_v5  ;;  %v331_v9 = vld [vmem:[%s265_s26 + $0x18] sm:$0xff] }
  0x7e   : > { %1266 = vmatpush3.xpose.msk.msra.mxu0 %vm340_vm1, %v336_v1  ;;  %1271 = vmatpush3.xpose.msk.msra.mxu1 %vm340_vm1, %v337_v3  ;;  %v339_v10 = vld [vmem:[%s274_s13 + $0x18] sm:$0xff]  ;;  %v334_v11 = vmul.f32 0.17677669, %v330_v6  ;;  %v335_v12 = vmul.f32 0.17677669, %v331_v9  ;;  %v702_v45 = vld [vmem:[%s1912_s21] sm:$0xff] }
  0x7f   : > { %1275 = vmatprep.subr.mxu0 %v1619_v0  ;;  %1280 = vmatprep.subr.mxu1 %v1619_v0  ;;  %v703_v46 = vld [vmem:[%s1912_s21 + $0x8] sm:$0xff]  ;;  %v704_v61 = vld [vmem:[%s1912_s21 + $0x10] sm:$0xff]  ;;  %v705_v6 = vld [vmem:[%s1912_s21 + $0x18] sm:$0xff]  ;;  %s1247_s19 = sshll.u32 %s1604_s18, 9  ;;  %s1043_s7 = sshll.u32 %s322_s27, 4  ;;  %s1941_s7 = int_to_ptr.vmem [resolvable:$true] %s1043_s7 }
  0x80   : > { %s1939_s5 = scalar_lea.hbm %s2038_s4, %s1247_s19  ;;  %s1012_s11 = scalar_lea.sflag [#allocation10], %s1860_s25 }
  0x81   : > { %1268 = vmatmul.mubr.msk.f32.vlgmr.msra.gmra.mrb[0].mxu0 %vm340_vm1, %v332_v4  ;;  %1273 = vmatmul.mubr.msk.f32.vlgmr.msra.gmra.mrb[0].mxu1 %vm340_vm1, %v333_v8  ;;  %s1494_s12 = scalar_lea.vmem %s1941_s7, 512  ;;  %p2070_p10 = scmp.ne.s32.totalorder %s2056_s28, 0 }
  0x82   : > { %1276 = vmatpush3.xpose.msk.msra.mxu0 %vm340_vm1, %v338_v7  ;;  %1277 = vmatprep.mubr.msk.f32.mxu0 %vm1620_vm0, %v1619_v0  ;;  %p1495_p0 = scmp.ne.s32.totalorder %s1941_s7, %s1494_s12  ;;  %s1621_s20 = smov [#allocation9]  }
  0x83   : > { %1281 = vmatpush3.xpose.msk.msra.mxu1 %vm340_vm1, %v339_v10  ;;  %1282 = vmatprep.mubr.msk.f32.mxu1 %vm1620_vm0, %v1619_v0  ;;  %s1498_s1 = sshll.u32 %s1621_s20, 4  ;;  %s1499_s1 = int_to_ptr.vmem [resolvable:$false] %s1498_s1 }
  0x84   : > { %1285 = vmatprep.subr.mxu0 %v1619_v0  ;;  %1290 = vmatprep.subr.mxu1 %v1619_v0  ;;  %p1496_p8 = pnand %p1495_p0, %p2070_p10  ;;  %s1500_s23 = scalar_lea.vmem %s1499_s1, 1024 }
  0x85   : > { %1278 = vmatmul.mubr.msk.f32.vlgmr.msra.gmra.mrb[2].mxu0 %vm340_vm1, %v334_v11  ;;  %p1501_p12 = scmp.lt.s32.totalorder %s1941_s7, %s1499_s1  ;;  %p1502_p1 = scmp.lt.s32.totalorder %s1500_s23, %s1494_s12 }
  0x86   : > { %1283 = vmatmul.mubr.msk.f32.vlgmr.msra.gmra.mrb[2].mxu1 %vm340_vm1, %v335_v12  ;;  %1287 = vmatprep.mubr.msk.f32.mxu0 %vm1620_vm0, %v1619_v0  ;;  %p1497_p9 = pneg %p1496_p8 }
  0x87   : > { %1292 = vmatprep.mubr.msk.f32.mxu1 %vm1620_vm0, %v1619_v0  ;;  %1286 = vmatpush3.msra.mxu0 %v702_v45  ;;  %p1503_p6 = por %p1502_p1, %p1501_p12 }
  0x88   : > { %1295 = vmatprep.subr.mxu0 %v1619_v0  ;;  %1291 = vmatpush3.msra.mxu1 %v703_v46 }
  0x89   : > { %1300 = vmatprep.subr.mxu1 %v1619_v0  ;;  %p1504_p13 = pnand %p1503_p6, %p1497_p9 }
 0x154   : > { %v413_v13 = vpop.f32.mrb[0].mxu0  ;;  %v489_v14 = vpop.f32.mrb[0].mxu1 }
 0x155   : > { %v1269_v15 = vpop.f32.mrb[1].mxu0  ;;  %v646_v16 = vsel %vm645_vm2, %v413_v13, -inf  ;;  %v1274_v17 = vpop.f32.mrb[1].mxu1  ;;  %v649_v18 = vsel %vm645_vm2, %v489_v14, -inf }
 0x156   : > { %647 = vmax.xlane.f32.xlu0 %v646_v16 }
 0x158   : > { %v565_v19 = vpop.f32.mrb[2].mxu0 }
 0x159   : > { %v1279_v20 = vpop.f32.mrb[3].mxu0  ;;  %v652_v21 = vsel %vm645_vm2, %v565_v19, -inf  ;;  %v641_v22 = vpop.f32.mrb[2].mxu1 }
 0x15a   : > { %650 = vmax.xlane.f32.xlu0 %v649_v18  ;;  %653 = vmax.xlane.f32.xlu1 %v652_v21  ;;  %v1284_v23 = vpop.f32.mrb[3].mxu1  ;;  %v655_v24 = vsel %vm645_vm2, %v641_v22, -inf }
 0x15e   : > { %656 = vmax.xlane.f32.xlu1 %v655_v24 }
 0x1e3   : > { %v648_v25 = vpop.xlane.xlu0 %647 }
 0x1e4   : > { %v658_v26 = vsub.f32 %v413_v13, %v648_v25 }
 0x1e6   : > { %v662_v27 = vmul.f32 1.442695, %v658_v26 }
 0x1e7   : > { %v651_v28 = vpop.xlane.xlu0 %650  ;;  %v654_v29 = vpop.xlane.xlu1 %653 }
 0x1e8   : > { %1388 = vpow2.f32 %v662_v27  ;;  %v659_v30 = vsub.f32 %v489_v14, %v651_v28  ;;  %v660_v31 = vsub.f32 %v565_v19, %v654_v29 }
 0x1ea   : > { %v664_v32 = vmul.f32 1.442695, %v659_v30  ;;  %v666_v33 = vmul.f32 1.442695, %v660_v31 }
 0x1eb   : > { %v657_v34 = vpop.xlane.xlu1 %656 }
 0x1ec   : > { %1390 = vpow2.f32 %v664_v32  ;;  %v661_v35 = vsub.f32 %v641_v22, %v657_v34 }
 0x1ed   : > { %1392 = vpow2.f32 %v666_v33 }
 0x1ee   : > { %v668_v36 = vmul.f32 1.442695, %v661_v35 }
 0x1f0   : > { %1394 = vpow2.f32 %v668_v36 }
 0x1f2   : > { %v1389_v37 = vpop.eup %1388 }
 0x1f3   : > { %v670_v38 = vsel %vm645_vm2, %v1389_v37, 0.0 }
 0x1f4   : > { %671 = vadd.xlane.f32.xlu0 %v670_v38 }
 0x1f6   : > { %v1391_v39 = vpop.eup %1390 }
 0x1f7   : > { %v1393_v40 = vpop.eup %1392  ;;  %v673_v41 = vsel %vm645_vm2, %v1391_v39, 0.0 }
 0x1f8   : > { %674 = vadd.xlane.f32.xlu1 %v673_v41  ;;  %v676_v42 = vsel %vm645_vm2, %v1393_v40, 0.0 }
 0x1f9   : > { %677 = vadd.xlane.f32.xlu0 %v676_v42 }
 0x1fa   : > { %v1395_v43 = vpop.eup %1394 }
 0x1fb   : > { %v679_v44 = vsel %vm645_vm2, %v1395_v43, 0.0 }
 0x1fc   : > { %680 = vadd.xlane.f32.xlu1 %v679_v44 }
 0x281   : > { %v672_v47 = vpop.xlane.xlu0 %671 }
 0x282   : > { %1396 = vrcp.f32 %v672_v47 }
 0x285   : > { %v675_v48 = vpop.xlane.xlu1 %674 }
 0x286   : > { %v678_v49 = vpop.xlane.xlu0 %677  ;;  %1398 = vrcp.f32 %v675_v48 }
 0x287   : > { %1400 = vrcp.f32 %v678_v49 }
 0x289   : > { %v681_v50 = vpop.xlane.xlu1 %680 }
 0x28a   : > { %1402 = vrcp.f32 %v681_v50 }
 0x28c   : > { %v1397_v51 = vpop.eup %1396 }
 0x28d   : > { %v686_v52 = vmul.f32 %v1397_v51, %v672_v47 }
 0x28f   : > { %v690_v53 = vsub.f32 2.0, %v686_v52 }
 0x290   : > { %v1399_v54 = vpop.eup %1398 }
 0x291   : > { %v1401_v55 = vpop.eup %1400  ;;  %v694_v56 = vmul.f32 %v1397_v51, %v690_v53  ;;  %v687_v57 = vmul.f32 %v1399_v54, %v675_v48 }
 0x292   : > { %v688_v58 = vmul.f32 %v1401_v55, %v678_v49 }
 0x293   : > { %v698_v59 = vmul.f32 %v1389_v37, %v694_v56  ;;  %v691_v60 = vsub.f32 2.0, %v687_v57 }
 0x294   : > { %v1403_v62 = vpop.eup %1402  ;;  %v692_v63 = vsub.f32 2.0, %v688_v58 }
 0x295   : > { %1002 = vst.msk [vmem:[%s322_s27] sm:$0xff] %vm645_vm2, %v698_v59  ;;  %v695_v1 = vmul.f32 %v1399_v54, %v691_v60  ;;  %v689_v2 = vmul.f32 %v1403_v62, %v681_v50  ;;  %1288 = vmatmul.mubr.msk.f32.vlgmr.msra.gmra.mrb[4].mxu0 %vm645_vm2, %v698_v59 }
 0x296   : > { %v696_v3 = vmul.f32 %v1401_v55, %v692_v63  ;;  %1296 = vmatpush3.msra.mxu0 %v704_v61  ;;  %1297 = vmatprep.mubr.msk.f32.mxu0 %vm1620_vm0, %v1619_v0 }
 0x297   : > { %v699_v4 = vmul.f32 %v1391_v39, %v695_v1  ;;  %v693_v5 = vsub.f32 2.0, %v689_v2 }
 0x298   : > { %v700_v7 = vmul.f32 %v1393_v40, %v696_v3 }
 0x299   : > { %1003 = vst.msk [vmem:[%s322_s27 + $0x8] sm:$0xff] %vm645_vm2, %v699_v4  ;;  %v697_v8 = vmul.f32 %v1403_v62, %v693_v5  ;;  %1293 = vmatmul.mubr.msk.f32.vlgmr.msra.gmra.mrb[4].mxu1 %vm645_vm2, %v699_v4 }
 0x29a   : > { %1004 = vst.msk [vmem:[%s322_s27 + $0x10] sm:$0xff] %vm645_vm2, %v700_v7  ;;  %1298 = vmatmul.mubr.msk.f32.vlgmr.msra.gmra.mrb[6].mxu0 %vm645_vm2, %v700_v7  ;;  %1301 = vmatpush3.msra.mxu1 %v705_v6 }
 0x29b   : > { %v701_v9 = vmul.f32 %v1395_v43, %v697_v8  ;;  %1302 = vmatprep.mubr.msk.f32.mxu1 %vm1620_vm0, %v1619_v0 }
 0x29d   : > { %1005 = vst.msk [vmem:[%s322_s27 + $0x18] sm:$0xff] %vm645_vm2, %v701_v9  ;;  %1303 = vmatmul.mubr.msk.f32.vlgmr.msra.gmra.mrb[6].mxu1 %vm645_vm2, %v701_v9 }
 0x29e   : > { %1507 = shalt.err (!%p1504_p13)
}
 0x29f   : > { %s1508_s6 = scalar_lea.hbm %s1939_s5, 512  ;;  %s1512_s26 = scalar_lea.hbm %s2038_s4, 1024 }
 0x2a0   : > { %p1509_p11 = scmp.ne.s32.totalorder %s1939_s5, %s1508_s6  ;;  %p1513_p7 = scmp.lt.u32.totalorder %s1939_s5, %s2038_s4 }
 0x2a1   : > { %p1514_p4 = scmp.lt.u32.totalorder %s1512_s26, %s1508_s6  ;;  %p1516_p0 = scmp.lt.u32.totalorder %s1508_s6, %s1939_s5 }
 0x2a2   : > { %p1510_p2 = pnand %p1509_p11, %p2070_p10 }
 0x2a3   : > { %p1515_p3 = por %p1514_p4, %p1513_p7 }
 0x2a4   : > { %p1511_p5 = pneg %p1510_p2 }
 0x2a5   : > { %p1517_p8 = por %p1516_p0, %p1515_p3 }
 0x2a7   : > { %p1518_p9 = pnand %p1517_p8, %p1511_p5 }
 0x2a9   : > { %1521 = shalt.err (!%p1518_p9)
}
 0x2aa   : > { %s1622_s13 = smov 128   ;;  %s1623_s21 = smov 8  }
 0x2ab   : > { %1312 = dma.vmem_to_hbm [thread:$0]  (%p2070_p10), %s1941_s7, 512, %s1939_s5, %s1012_s11, %s1622_s13, %s1622_s13, %s1623_s21  }
 0x2ac   : > { %s315_s27 = scalar_lea.vmem [#allocation8], %s1863_s14  ;;  %s1981_s5 = scalar_lea.hbm %s2037_s3, %s1247_s19 }
 0x2ad   : > { %s1026_s29 = sshll.u32 %s315_s27, 4  ;;  %s1007_s7 = scalar_lea.sflag [#allocation4], %s1860_s25  ;;  %s1973_s29 = int_to_ptr.vmem [resolvable:$true] %s1026_s29 }
 0x2ae   : > { %s1522_s11 = scalar_lea.vmem %s1973_s29, 512  ;;  %s1624_s12 = smov [#allocation8]  }
 0x2af   : > { %p1523_p12 = scmp.ne.s32.totalorder %s1973_s29, %s1522_s11  ;;  %s1526_s20 = sshll.u32 %s1624_s12, 4  ;;  %s1527_s20 = int_to_ptr.vmem [resolvable:$false] %s1526_s20 }
 0x2b0   : > { %s1528_s1 = scalar_lea.vmem %s1527_s20, 1024  ;;  %p1529_p13 = scmp.lt.s32.totalorder %s1973_s29, %s1527_s20 }
 0x2b1   : > { %p1524_p1 = pnand %p1523_p12, %p2070_p10  ;;  %p1530_p11 = scmp.lt.s32.totalorder %s1528_s1, %s1522_s11 }
 0x2b3   : > { %p1525_p6 = pneg %p1524_p1  ;;  %p1531_p2 = por %p1530_p11, %p1529_p13 }
 0x2b5   : > { %p1532_p5 = pnand %p1531_p2, %p1525_p6 }
 0x368   : > { %v775_v0 = vpop.f32.mrb[4].mxu0 }
 0x369   : > { %998 = vst.msk [vmem:[%s315_s27] sm:$0xff] %vm340_vm1, %v775_v0  ;;  %v1289_v10 = vpop.f32.mrb[5].mxu0 }
 0x36c   : > { %v848_v11 = vpop.f32.mrb[4].mxu1 }
 0x36d   : > { %999 = vst.msk [vmem:[%s315_s27 + $0x8] sm:$0xff] %vm340_vm1, %v848_v11  ;;  %v921_v12 = vpop.f32.mrb[6].mxu0  ;;  %v1294_v13 = vpop.f32.mrb[5].mxu1 }
 0x36e   : > { %1000 = vst.msk [vmem:[%s315_s27 + $0x10] sm:$0xff] %vm340_vm1, %v921_v12  ;;  %v1299_v14 = vpop.f32.mrb[7].mxu0 }
 0x370   : > { %v994_v15 = vpop.f32.mrb[6].mxu1 }
 0x371   : > { %1001 = vst.msk [vmem:[%s315_s27 + $0x18] sm:$0xff] %vm340_vm1, %v994_v15  ;;  %v1304_v16 = vpop.f32.mrb[7].mxu1 }
 0x372   : > { %1535 = shalt.err (!%p1532_p5)
}
 0x373   : > { %s1536_s18 = scalar_lea.hbm %s1981_s5, 512  ;;  %s1540_s6 = scalar_lea.hbm %s2037_s3, 1024 }
 0x374   : > { %p1537_p7 = scmp.ne.s32.totalorder %s1981_s5, %s1536_s18  ;;  %p1541_p0 = scmp.lt.u32.totalorder %s1981_s5, %s2037_s3 }
 0x375   : > { %p1542_p8 = scmp.lt.u32.totalorder %s1540_s6, %s1536_s18  ;;  %p1544_p12 = scmp.lt.u32.totalorder %s1536_s18, %s1981_s5 }
 0x376   : > { %p1538_p4 = pnand %p1537_p7, %p2070_p10 }
 0x377   : > { %p1543_p9 = por %p1542_p8, %p1541_p0 }
 0x378   : > { %p1539_p3 = pneg %p1538_p4 }
 0x379   : > { %p1545_p1 = por %p1544_p12, %p1543_p9 }
 0x37b   : > { %p1546_p6 = pnand %p1545_p1, %p1539_p3 }
 0x37d   : > { %1549 = shalt.err (!%p1546_p6)
}
 0x37e   : > { %1311 = dma.vmem_to_hbm [thread:$0]  (%p2070_p10), %s1973_s29, 512, %s1981_s5, %s1007_s7, %s1622_s13, %s1622_s13, %s1623_s21  }
 0x37f PF: > { %s2071_s26 = sld [smem:[#allocation16_spill]]  ;;  %s1058_s22 = sand.u32 1, %s1592_s15  }
 0x380   : > { %p2072_p13 = scmp.ne.s32.totalorder %s2058_s30, 0  ;;  %s1059_s24 = scalar_lea.sflag [#allocation4], %s1058_s22 }
 0x385   : > { %p2073_p11 = scmp.ge.s32.totalorder %s2071_s26, 2 }
 0x387   : > { %p1326_p2 = pnand %p2073_p11, %p2072_p13 }
 0x389   : > { %1583 = dma.done.wait (!%p1326_p2), %s1059_s24, 512  }
 0x38a   : > { %1585 = vsyncadd (!%p1326_p2), %s1059_s24, 4294966784  ;;  %s1068_s28 = scalar_lea.sflag [#allocation10], %s1058_s22 }
 0x38b   : > { %1587 = dma.done.wait (!%p1326_p2), %s1068_s28, 512  }
 0x38c   : > { %1589 = vsyncadd (!%p1326_p2), %s1068_s28, 4294966784  ;;  %s27_s20 = sadd.s32 1, %s2071_s26   ;;  %s2074_s25 = sld [smem:[#allocation18_spill]] }
 0x38d   : > { %p24_p5 = scmp.ge.s32.totalorder %s27_s20, 4   ;;  %s2075_s18 = sld [smem:[#allocation15_spill]] }
 0x38e   : > { %s2076_s19 = sld [smem:[#allocation17_spill]]  ;;  %s2077_s15 = smov %s1596_s16 }
 0x38f   : > { %s2078_s16 = smov %s1600_s17  ;;  %26 = sbr.rel (!%p24_p5) target bundleno = 12 (0xc), region = 118 }
 0x392   : > { %s2079_s17 = smov %s2074_s25 }
 0x396   :  { %1073 = vsyncpa [#allocation3], 1 }
 0x397   :  { %1075 = vsyncpa [#allocation3 + $0x1], 1 }
 0x398   :  { %1076 = vsyncpa [#allocation6], 1 }
 0x399   :  { %1078 = vsyncpa [#allocation6 + $0x1], 1 }
 0x39a   :  { %1079 = vsyncpa [#allocation4], 1 }
 0x39b   :  { %1081 = vsyncpa [#allocation4 + $0x1], 1 }
 0x39c   :  { %1082 = vsyncpa [#allocation10], 1 }
 0x39d   :  { %1084 = vsyncpa [#allocation10 + $0x1], 1 }

</bundles_post_ra>
